<compile_context>
chip_gen: v7x
topology: tpu7x:2x2x1
jax: 0.10.0
libtpu: 0.0.40
codegen_flags: <defaults>
</compile_context>

<pallas_src>
import functools

import jax
import jax.numpy as jnp
from jax.experimental import pallas as pl
from jax.experimental.pallas import tpu as pltpu

LN_EPS = 1e-5        # torch.nn.LayerNorm default
LOG_STD_MIN = -20.0  # typical args.log_std_min
LOG_STD_MAX = 2.0    # typical args.log_std_max
HEAD_LANES = 128     # fused head padded to a full lane-dense vreg width


def _layer_norm(h, gamma, beta):
    # One-pass LN: independent sum(x) / sum(x*x) reductions, var = E[x^2]-mu^2.
    inv_n = 1.0 / h.shape[-1]
    s1 = jnp.sum(h, axis=-1, keepdims=True)
    s2 = jnp.sum(h * h, axis=-1, keepdims=True)
    mu = s1 * inv_n
    var = s2 * inv_n - mu * mu
    return (h - mu) * jax.lax.rsqrt(var + LN_EPS) * gamma + beta


def policy_kernel(x_ref,
                  w1_ref, p1_ref,
                  w2_ref, p2_ref,
                  wh_ref, bh_ref,
                  o_ref, *, num_actions, log_std_min, log_std_max):
    # bf16 operands on the MXU, f32 accumulation & elementwise math.
    xb = x_ref[...].astype(jnp.bfloat16)

    # linear1 -> LayerNorm -> ReLU        (p1 rows: bias, gamma, beta)
    h1 = jnp.dot(xb, w1_ref[...], preferred_element_type=jnp.float32) + p1_ref[0:1, :]
    h1 = jnp.maximum(_layer_norm(h1, p1_ref[1:2, :], p1_ref[2:3, :]), 0.0)

    # linear2 -> LayerNorm -> ReLU
    h2 = jnp.dot(h1.astype(jnp.bfloat16), w2_ref[...],
                 preferred_element_type=jnp.float32) + p2_ref[0:1, :]
    h2 = jnp.maximum(_layer_norm(h2, p2_ref[1:2, :], p2_ref[2:3, :]), 0.0)

    # fused head, zero-padded to 128 lanes: [0,A)=mean, [A,2A)=log_std, rest 0.
    y = jnp.dot(h2.astype(jnp.bfloat16), wh_ref[...],
                preferred_element_type=jnp.float32) + bh_ref[...]
    lane = jax.lax.broadcasted_iota(jnp.int32, y.shape, 1)
    y = jnp.where(lane < num_actions, y, jnp.clip(y, log_std_min, log_std_max))
    o_ref[...] = y.astype(o_ref.dtype)   # lane-dense, unmasked store


def _default_num_blocks():
    # v7x has 2 TensorCores/chip -> 2 batch blocks so the "parallel" grid axis
    # can be sharded across both cores; v5e/v6e (1 TC) get a single block
    # (extra grid steps there are just a serial loop = pure overhead).
    try:
        kind = jax.devices()[0].device_kind.lower()
    except Exception:
        return 1
    return 2 if ("v7" in kind or "tpu7" in kind) else 1


def policy_forward(state, params, num_actions, *, num_blocks=None):
    """state: [B, num_inputs] -> (mean [B, A], log_std [B, A])."""
    w1, p1, w2, p2, wh, bh = params
    B, num_inputs = state.shape
    head_lanes = wh.shape[1]

    if num_blocks is None:
        num_blocks = _default_num_blocks()
    num_blocks = max(1, min(int(num_blocks), pl.cdiv(B, 8)))

    # One batch block per grid step / TensorCore, rounded up to sublane width.
    tm = pl.cdiv(pl.cdiv(B, num_blocks), 8) * 8
    bp = num_blocks * tm
    x = state if bp == B else jnp.pad(state, ((0, bp - B), (0, 0)))

    def resident(a):
        # Full-array block, constant index map -> fetched once, stays in VMEM.
        return pl.BlockSpec(a.shape, lambda i, _nd=a.ndim: (0,) * _nd)

    kernel = functools.partial(policy_kernel,
                               num_actions=num_actions,
                               log_std_min=LOG_STD_MIN,
                               log_std_max=LOG_STD_MAX)
    weights = (w1, p1, w2, p2, wh, bh)

    out = pl.pallas_call(
        kernel,
        out_shape=jax.ShapeDtypeStruct((bp, head_lanes), jnp.float32),
        grid=(num_blocks,),
        in_specs=[pl.BlockSpec((tm, num_inputs), lambda i: (i, 0))]
                 + [resident(a) for a in weights],
        out_specs=pl.BlockSpec((tm, head_lanes), lambda i: (i, 0)),
        compiler_params=pltpu.CompilerParams(
            dimension_semantics=("parallel",)),
    )(x, *weights)

    mean = out[:B, :num_actions]
    log_std = out[:B, num_actions:2 * num_actions]
    return mean, log_std


def init_params(key, num_inputs, num_actions, hidden_1, head_lanes=HEAD_LANES):
    """Synthetic init matching nn.Linear / nn.LayerNorm shapes.

    Linear weights are stored transposed as [in, out] in bf16.  Per-layer
    (bias, ln_gamma, ln_beta) are packed as f32 [3, F].  The two head
    projections (mean_linear, log_std_linear) are fused along the output axis
    and zero-padded to `head_lanes` lanes.
    """
    hidden_2 = hidden_1 // 2
    ks = jax.random.split(key, 8)

    def lin(kw, kb, fan_in, fan_out):
        bound = 1.0 / (fan_in ** 0.5)
        w = jax.random.uniform(kw, (fan_in, fan_out), jnp.float32, -bound, bound)
        b = jax.random.uniform(kb, (fan_out,), jnp.float32, -bound, bound)
        return w, b

    w1, b1 = lin(ks[0], ks[1], num_inputs, hidden_1)
    w2, b2 = lin(ks[2], ks[3], hidden_1, hidden_2)
    wm, bm = lin(ks[4], ks[5], hidden_2, num_actions)
    ws, bs = lin(ks[6], ks[7], hidden_2, num_actions)

    # Packed per-layer params: rows = (bias, ln_gamma=1, ln_beta=0).
    p1 = jnp.stack([b1, jnp.ones_like(b1), jnp.zeros_like(b1)], axis=0)
    p2 = jnp.stack([b2, jnp.ones_like(b2), jnp.zeros_like(b2)], axis=0)

    # Fused head, zero-padded to head_lanes output lanes.
    wh = jnp.zeros((hidden_2, head_lanes), jnp.float32)
    wh = wh.at[:, :num_actions].set(wm)
    wh = wh.at[:, num_actions:2 * num_actions].set(ws)
    bh = jnp.zeros((1, head_lanes), jnp.float32)
    bh = bh.at[0, :num_actions].set(bm)
    bh = bh.at[0, num_actions:2 * num_actions].set(bs)

    bf = lambda w: w.astype(jnp.bfloat16)
    return (bf(w1), p1, bf(w2), p2, bf(wh), bh)


def reference_forward(state, params, num_actions):
    """Pure-JAX reference with the same bf16-matmul / f32-accumulate numerics."""
    w1, p1, w2, p2, wh, bh = params
    h1 = jnp.dot(state.astype(jnp.bfloat16), w1,
                 preferred_element_type=jnp.float32) + p1[0:1]
    h1 = jnp.maximum(_layer_norm(h1, p1[1:2], p1[2:3]), 0.0)
    h2 = jnp.dot(h1.astype(jnp.bfloat16), w2,
                 preferred_element_type=jnp.float32) + p2[0:1]
    h2 = jnp.maximum(_layer_norm(h2, p2[1:2], p2[2:3]), 0.0)
    y = jnp.dot(h2.astype(jnp.bfloat16), wh,
                preferred_element_type=jnp.float32) + bh
    mean = y[:, :num_actions]
    log_std = jnp.clip(y[:, num_actions:2 * num_actions], LOG_STD_MIN, LOG_STD_MAX)
    return mean, log_std


if __name__ == "__main__":
    # Shapes implied by the module:
    #   args.seq_output_size = 32, args.actor_output = 8, args.hidden_size = 64
    B, NUM_INPUTS, NUM_ACTIONS, HIDDEN_1 = 64, 32, 8, 64

    key = jax.random.PRNGKey(0)
    k_state, k_params = jax.random.split(key)
    state = jax.random.normal(k_state, (B, NUM_INPUTS), jnp.float32)
    params = init_params(k_params, NUM_INPUTS, NUM_ACTIONS, HIDDEN_1)

    mean, log_std = policy_forward(state, params, NUM_ACTIONS)
    mean = jax.block_until_ready(mean)
    log_std = jax.block_until_ready(log_std)

    mean_ref, log_std_ref = reference_forward(state, params, NUM_ACTIONS)
    assert mean.shape == (B, NUM_ACTIONS), mean.shape
    assert log_std.shape == (B, NUM_ACTIONS), log_std.shape
    assert jnp.allclose(mean, mean_ref, atol=1e-3, rtol=1e-3)
    assert jnp.allclose(log_std, log_std_ref, atol=1e-3, rtol=1e-3)

    print("KERNEL_OK")
</pallas_src>

<mosaic_0001>
module attributes {stable_mosaic.version = 11 : i64} {
  func.func @policy_kernel(%arg0: i32, %arg1: memref<64x32xf32, #tpu.memory_space<vmem>>, %arg2: memref<32x64xbf16, #tpu.memory_space<vmem>>, %arg3: memref<3x64xf32, #tpu.memory_space<vmem>>, %arg4: memref<64x32xbf16, #tpu.memory_space<vmem>>, %arg5: memref<3x32xf32, #tpu.memory_space<vmem>>, %arg6: memref<32x128xbf16, #tpu.memory_space<vmem>>, %arg7: memref<1x128xf32, #tpu.memory_space<vmem>>, %arg8: memref<64x128xf32, #tpu.memory_space<vmem>>) attributes {dimension_semantics = [#tpu.dimension_semantics<parallel>], iteration_bounds = array<i64: 1>, scalar_prefetch = 0 : i64, scratch_operands = 0 : i64, tpu.core_type = #tpu.core_type<tc>, window_params = [{transform_indices = @transform_0, window_bounds = array<i64: 64, 32>}, {pipeline_mode = #tpu.pipeline_mode<synchronous>, transform_indices = @transform_1, window_bounds = array<i64: 32, 64>}, {pipeline_mode = #tpu.pipeline_mode<synchronous>, transform_indices = @transform_2, window_bounds = array<i64: 3, 64>}, {pipeline_mode = #tpu.pipeline_mode<synchronous>, transform_indices = @transform_3, window_bounds = array<i64: 64, 32>}, {pipeline_mode = #tpu.pipeline_mode<synchronous>, transform_indices = @transform_4, window_bounds = array<i64: 3, 32>}, {pipeline_mode = #tpu.pipeline_mode<synchronous>, transform_indices = @transform_5, window_bounds = array<i64: 32, 128>}, {pipeline_mode = #tpu.pipeline_mode<synchronous>, transform_indices = @transform_6, window_bounds = array<i64: 1, 128>}, {transform_indices = @transform_7, window_bounds = array<i64: 64, 128>}]} {
    %c0 = arith.constant 0 : index
    %c0_0 = arith.constant 0 : index
    %0 = vector.load %arg1[%c0, %c0_0] : memref<64x32xf32, #tpu.memory_space<vmem>>, vector<64x32xf32>
    %1 = arith.truncf %0 : vector<64x32xf32> to vector<64x32xbf16>
    %c0_1 = arith.constant 0 : index
    %c0_2 = arith.constant 0 : index
    %2 = vector.load %arg2[%c0_1, %c0_2] : memref<32x64xbf16, #tpu.memory_space<vmem>>, vector<32x64xbf16>
    %cst = arith.constant dense<0.000000e+00> : vector<64x64xf32>
    %3 = tpu.matmul %1, %2, %cst {dimension_numbers = #tpu.dot_dimension_numbers<[1], [0], [0], [1], [0, 0, 1, 1], [], []>} : vector<64x32xbf16>, vector<32x64xbf16>, vector<64x64xf32> -> vector<64x64xf32>
    %c0_3 = arith.constant 0 : index
    %c0_4 = arith.constant 0 : index
    %4 = vector.load %arg3[%c0_3, %c0_4] : memref<3x64xf32, #tpu.memory_space<vmem>>, vector<1x64xf32>
    %5 = vector.broadcast %4 : vector<1x64xf32> to vector<64x64xf32>
    %6 = arith.addf %3, %5 : vector<64x64xf32>
    %c1 = arith.constant 1 : index
    %c0_5 = arith.constant 0 : index
    %7 = vector.load %arg3[%c1, %c0_5] : memref<3x64xf32, #tpu.memory_space<vmem>>, vector<1x64xf32>
    %c2 = arith.constant 2 : index
    %c0_6 = arith.constant 0 : index
    %8 = vector.load %arg3[%c2, %c0_6] : memref<3x64xf32, #tpu.memory_space<vmem>>, vector<1x64xf32>
    %cst_7 = arith.constant dense<0.000000e+00> : vector<64xf32>
    %9 = vector.multi_reduction <add>, %6, %cst_7 [1] : vector<64x64xf32> to vector<64xf32>
    %10 = vector.shape_cast %9 : vector<64xf32> to vector<64x1xf32>
    %11 = arith.mulf %6, %6 : vector<64x64xf32>
    %cst_8 = arith.constant dense<0.000000e+00> : vector<64xf32>
    %12 = vector.multi_reduction <add>, %11, %cst_8 [1] : vector<64x64xf32> to vector<64xf32>
    %13 = vector.shape_cast %12 : vector<64xf32> to vector<64x1xf32>
    %cst_9 = arith.constant 1.562500e-02 : f32
    %14 = vector.broadcast %cst_9 : f32 to vector<64x1xf32>
    %15 = arith.mulf %10, %14 : vector<64x1xf32>
    %cst_10 = arith.constant 1.562500e-02 : f32
    %16 = vector.broadcast %cst_10 : f32 to vector<64x1xf32>
    %17 = arith.mulf %13, %16 : vector<64x1xf32>
    %18 = arith.mulf %15, %15 : vector<64x1xf32>
    %19 = arith.subf %17, %18 : vector<64x1xf32>
    %20 = vector.broadcast %15 : vector<64x1xf32> to vector<64x64xf32>
    %21 = arith.subf %6, %20 : vector<64x64xf32>
    %cst_11 = arith.constant 9.99999974E-6 : f32
    %22 = vector.broadcast %cst_11 : f32 to vector<64x1xf32>
    %23 = arith.addf %19, %22 : vector<64x1xf32>
    %24 = math.rsqrt %23 : vector<64x1xf32>
    %25 = vector.broadcast %24 : vector<64x1xf32> to vector<64x64xf32>
    %26 = arith.mulf %21, %25 : vector<64x64xf32>
    %27 = vector.broadcast %7 : vector<1x64xf32> to vector<64x64xf32>
    %28 = arith.mulf %26, %27 : vector<64x64xf32>
    %29 = vector.broadcast %8 : vector<1x64xf32> to vector<64x64xf32>
    %30 = arith.addf %28, %29 : vector<64x64xf32>
    %cst_12 = arith.constant 0.000000e+00 : f32
    %31 = vector.broadcast %cst_12 : f32 to vector<64x64xf32>
    %32 = arith.maximumf %30, %31 : vector<64x64xf32>
    %33 = arith.truncf %32 : vector<64x64xf32> to vector<64x64xbf16>
    %c0_13 = arith.constant 0 : index
    %c0_14 = arith.constant 0 : index
    %34 = vector.load %arg4[%c0_13, %c0_14] : memref<64x32xbf16, #tpu.memory_space<vmem>>, vector<64x32xbf16>
    %cst_15 = arith.constant dense<0.000000e+00> : vector<64x32xf32>
    %35 = tpu.matmul %33, %34, %cst_15 {dimension_numbers = #tpu.dot_dimension_numbers<[1], [0], [0], [1], [0, 0, 1, 1], [], []>} : vector<64x64xbf16>, vector<64x32xbf16>, vector<64x32xf32> -> vector<64x32xf32>
    %c0_16 = arith.constant 0 : index
    %c0_17 = arith.constant 0 : index
    %36 = vector.load %arg5[%c0_16, %c0_17] : memref<3x32xf32, #tpu.memory_space<vmem>>, vector<1x32xf32>
    %37 = vector.broadcast %36 : vector<1x32xf32> to vector<64x32xf32>
    %38 = arith.addf %35, %37 : vector<64x32xf32>
    %c1_18 = arith.constant 1 : index
    %c0_19 = arith.constant 0 : index
    %39 = vector.load %arg5[%c1_18, %c0_19] : memref<3x32xf32, #tpu.memory_space<vmem>>, vector<1x32xf32>
    %c2_20 = arith.constant 2 : index
    %c0_21 = arith.constant 0 : index
    %40 = vector.load %arg5[%c2_20, %c0_21] : memref<3x32xf32, #tpu.memory_space<vmem>>, vector<1x32xf32>
    %cst_22 = arith.constant dense<0.000000e+00> : vector<64xf32>
    %41 = vector.multi_reduction <add>, %38, %cst_22 [1] : vector<64x32xf32> to vector<64xf32>
    %42 = vector.shape_cast %41 : vector<64xf32> to vector<64x1xf32>
    %43 = arith.mulf %38, %38 : vector<64x32xf32>
    %cst_23 = arith.constant dense<0.000000e+00> : vector<64xf32>
    %44 = vector.multi_reduction <add>, %43, %cst_23 [1] : vector<64x32xf32> to vector<64xf32>
    %45 = vector.shape_cast %44 : vector<64xf32> to vector<64x1xf32>
    %cst_24 = arith.constant 3.125000e-02 : f32
    %46 = vector.broadcast %cst_24 : f32 to vector<64x1xf32>
    %47 = arith.mulf %42, %46 : vector<64x1xf32>
    %cst_25 = arith.constant 3.125000e-02 : f32
    %48 = vector.broadcast %cst_25 : f32 to vector<64x1xf32>
    %49 = arith.mulf %45, %48 : vector<64x1xf32>
    %50 = arith.mulf %47, %47 : vector<64x1xf32>
    %51 = arith.subf %49, %50 : vector<64x1xf32>
    %52 = vector.broadcast %47 : vector<64x1xf32> to vector<64x32xf32>
    %53 = arith.subf %38, %52 : vector<64x32xf32>
    %cst_26 = arith.constant 9.99999974E-6 : f32
    %54 = vector.broadcast %cst_26 : f32 to vector<64x1xf32>
    %55 = arith.addf %51, %54 : vector<64x1xf32>
    %56 = math.rsqrt %55 : vector<64x1xf32>
    %57 = vector.broadcast %56 : vector<64x1xf32> to vector<64x32xf32>
    %58 = arith.mulf %53, %57 : vector<64x32xf32>
    %59 = vector.broadcast %39 : vector<1x32xf32> to vector<64x32xf32>
    %60 = arith.mulf %58, %59 : vector<64x32xf32>
    %61 = vector.broadcast %40 : vector<1x32xf32> to vector<64x32xf32>
    %62 = arith.addf %60, %61 : vector<64x32xf32>
    %cst_27 = arith.constant 0.000000e+00 : f32
    %63 = vector.broadcast %cst_27 : f32 to vector<64x32xf32>
    %64 = arith.maximumf %62, %63 : vector<64x32xf32>
    %65 = arith.truncf %64 : vector<64x32xf32> to vector<64x32xbf16>
    %c0_28 = arith.constant 0 : index
    %c0_29 = arith.constant 0 : index
    %66 = vector.load %arg6[%c0_28, %c0_29] : memref<32x128xbf16, #tpu.memory_space<vmem>>, vector<32x128xbf16>
    %cst_30 = arith.constant dense<0.000000e+00> : vector<64x128xf32>
    %67 = tpu.matmul %65, %66, %cst_30 {dimension_numbers = #tpu.dot_dimension_numbers<[1], [0], [0], [1], [0, 0, 1, 1], [], []>} : vector<64x32xbf16>, vector<32x128xbf16>, vector<64x128xf32> -> vector<64x128xf32>
    %c0_31 = arith.constant 0 : index
    %c0_32 = arith.constant 0 : index
    %68 = vector.load %arg7[%c0_31, %c0_32] : memref<1x128xf32, #tpu.memory_space<vmem>>, vector<1x128xf32>
    %69 = vector.broadcast %68 : vector<1x128xf32> to vector<64x128xf32>
    %70 = arith.addf %67, %69 : vector<64x128xf32>
    %71 = tpu.iota {dimensions = array<i32: 1>} : vector<64x128xi32>
    %c8_i32 = arith.constant 8 : i32
    %72 = vector.broadcast %c8_i32 : i32 to vector<64x128xi32>
    %73 = arith.cmpi slt, %71, %72 : vector<64x128xi32>
    %cst_33 = arith.constant -2.000000e+01 : f32
    %cst_34 = arith.constant 2.000000e+00 : f32
    %74 = vector.broadcast %cst_33 : f32 to vector<64x128xf32>
    %75 = arith.maximumf %74, %70 : vector<64x128xf32>
    %76 = vector.broadcast %cst_34 : f32 to vector<64x128xf32>
    %77 = arith.minimumf %76, %75 : vector<64x128xf32>
    %78 = arith.select %73, %70, %77 : vector<64x128xi1>, vector<64x128xf32>
    %c0_35 = arith.constant 0 : index
    %c0_36 = arith.constant 0 : index
    %79 = vector.load %arg8[%c0_35, %c0_36] : memref<64x128xf32, #tpu.memory_space<vmem>>, vector<64x128xf32>
    tpu.vector_store %arg8[%c0_35, %c0_36], %78 {strides = array<i32>} : memref<64x128xf32, #tpu.memory_space<vmem>>, vector<64x128xf32>,
    return
  }
  func.func @transform_0(%arg0: i32) -> (i32, i32) {
    %c0_i32 = arith.constant 0 : i32
    %c0_i32_0 = arith.constant 0 : i32
    return %arg0, %c0_i32 : i32, i32
  }
  func.func @transform_1(%arg0: i32) -> (i32, i32) {
    %c0_i32 = arith.constant 0 : i32
    %c0_i32_0 = arith.constant 0 : i32
    %c0_i32_1 = arith.constant 0 : i32
    return %c0_i32, %c0_i32_0 : i32, i32
  }
  func.func @transform_2(%arg0: i32) -> (i32, i32) {
    %c0_i32 = arith.constant 0 : i32
    %c0_i32_0 = arith.constant 0 : i32
    %c0_i32_1 = arith.constant 0 : i32
    return %c0_i32, %c0_i32_0 : i32, i32
  }
  func.func @transform_3(%arg0: i32) -> (i32, i32) {
    %c0_i32 = arith.constant 0 : i32
    %c0_i32_0 = arith.constant 0 : i32
    %c0_i32_1 = arith.constant 0 : i32
    return %c0_i32, %c0_i32_0 : i32, i32
  }
  func.func @transform_4(%arg0: i32) -> (i32, i32) {
    %c0_i32 = arith.constant 0 : i32
    %c0_i32_0 = arith.constant 0 : i32
    %c0_i32_1 = arith.constant 0 : i32
    return %c0_i32, %c0_i32_0 : i32, i32
  }
  func.func @transform_5(%arg0: i32) -> (i32, i32) {
    %c0_i32 = arith.constant 0 : i32
    %c0_i32_0 = arith.constant 0 : i32
    %c0_i32_1 = arith.constant 0 : i32
    return %c0_i32, %c0_i32_0 : i32, i32
  }
  func.func @transform_6(%arg0: i32) -> (i32, i32) {
    %c0_i32 = arith.constant 0 : i32
    %c0_i32_0 = arith.constant 0 : i32
    %c0_i32_1 = arith.constant 0 : i32
    return %c0_i32, %c0_i32_0 : i32, i32
  }
  func.func @transform_7(%arg0: i32) -> (i32, i32) {
    %c0_i32 = arith.constant 0 : i32
    %c0_i32_0 = arith.constant 0 : i32
    return %arg0, %c0_i32 : i32, i32
  }
}

</mosaic_0001>

<bundles_post_ra>
// kernel: tpu_custom_call.1
= control target key start
LH: loop header
LB: loop body
LE: loop exit
PB: predicated region body
PF: predicated region fallthrough
CT: control target
= control target key end

     0   :  { %vm61_vm0 = vcmask 261120   ;;  %s1197_s0 = inlined_call_operand.vmem [shape: f32[64,32], index: 0, kind: input, shape index: {}]   ;;  %s1198_s1 = inlined_call_operand.vmem [shape: bf16[32,64], index: 1, kind: input, shape index: {}]   ;;  %s1199_s2 = inlined_call_operand.vmem [shape: f32[3,64], index: 2, kind: input, shape index: {}]   ;;  %s1200_s3 = inlined_call_operand.vmem [shape: bf16[64,32], index: 3, kind: input, shape index: {}]   ;;  %s1201_s4 = inlined_call_operand.vmem [shape: f32[3,32], index: 4, kind: input, shape index: {}]   ;;  %s1202_s5 = inlined_call_operand.vmem [shape: bf16[32,128], index: 5, kind: input, shape index: {}]   ;;  %s1203_s6 = inlined_call_operand.vmem [shape: f32[1,128], index: 6, kind: input, shape index: {}]   ;;  %s1204_s7 = inlined_call_operand.hbm [shape: f32[64,128], index: 7, kind: output, shape index: {}]  }
   0x1   :  { %v811_v0 = vld [vmem:[%s1198_s1] sm:$0xff]   ;;  %v812_v1 = vld [vmem:[%s1198_s1 + $0x8] sm:$0xff]   ;;  %v30_v5 = vld [vmem:[%s1197_s0 + $0x10] sm:$0xff] }
   0x2   :  { %768 = vmatprep.subr.bf16.mxu0 %v811_v0  ;;  %v28_v2 = vld [vmem:[%s1197_s0] sm:$0xff]  ;;  %v29_v3 = vld [vmem:[%s1197_s0 + $0x8] sm:$0xff]  ;;  %v31_v6 = vld [vmem:[%s1197_s0 + $0x18] sm:$0xff] }
   0x3   :  { %769 = vmatpush3.bf16.msra.mxu0 %v811_v0  ;;  %v36_v4 = vpack.c.bf16 %v29_v3, %v28_v2  ;;  %v32_v7 = vld [vmem:[%s1197_s0 + $0x20] sm:$0xff]  ;;  %v33_v8 = vld [vmem:[%s1197_s0 + $0x28] sm:$0xff]  ;;  %v37_v9 = vpack.c.bf16 %v31_v6, %v30_v5 }
   0x4   :  { %770 = vmatprep.subr.bf16.mxu0 %v812_v1  ;;  %v38_v10 = vpack.c.bf16 %v33_v8, %v32_v7 }
   0x5   :  { %772 = vmatprep.mubr.msk.bf16.mxu0 %vm61_vm0, %v36_v4 }
   0x7   :  { %771 = vmatpush3.bf16.msra.mxu0 %v812_v1 }
   0x8   :  { %12 = vsyncpa [#allocation3], 0  ;;  %v34_v11 = vld [vmem:[%s1197_s0 + $0x30] sm:$0xff]  ;;  %v35_v12 = vld [vmem:[%s1197_s0 + $0x38] sm:$0xff]  ;;  %vm141_vm1 = vcmask 523264  }
   0x9   :  { %v39_v13 = vpack.c.bf16 %v35_v12, %v34_v11  ;;  %v721_v14 = vld [vmem:[%s1199_s2] ss:$0 sm:$0xff]  ;;  %v814_v56 = vld [vmem:[%s1200_s3 + $0x8] sm:$0xff]   ;;  %v815_v57 = vld [vmem:[%s1200_s3 + $0x10] sm:$0xff]  }
   0xa   :  { %773 = vmatmul.mubr.msk.bf16.vlgmr.msra.gmra.mrb[0].mxu0 %vm61_vm0, %v37_v9  ;;  %v813_v55 = vld [vmem:[%s1200_s3] sm:$0xff]   ;;  %v816_v58 = vld [vmem:[%s1200_s3 + $0x18] sm:$0xff]  }
   0xb   :  { %776 = vmatprep.mubr.msk.bf16.mxu0 %vm61_vm0, %v38_v10  ;;  %780 = vmatprep.subr.bf16.mxu1 %v813_v55 }
   0xc   :  { %781 = vmatpush3.bf16.msra.mxu1 %v813_v55 }
   0xd   :  { %782 = vmatprep.subr.bf16.mxu1 %v814_v56 }
  0x10   :  { %783 = vmatpush3.bf16.msra.mxu1 %v814_v56 }
  0x11   :  { %784 = vmatprep.subr.bf16.mxu1 %v815_v57 }
  0x12   :  { %777 = vmatmul.mubr.msk.bf16.gmra.mrb[4].mxu0 %vm61_vm0, %v39_v13 }
  0x14   :  { %785 = vmatpush3.bf16.msra.mxu1 %v815_v57 }
  0x15   :  { %786 = vmatprep.subr.bf16.mxu1 %v816_v58 }
  0x18   :  { %787 = vmatpush3.bf16.msra.mxu1 %v816_v58 }
  0xdd   :  { %v774_v15 = vpop.f32.mrb[0].mxu0 }
  0xde   :  { %v955_v16 = vadd.f32 %v774_v15, %v721_v14  ;;  %v108_v17 = vpop.f32.mrb[1].mxu0 }
  0xdf   :  { %v957_v18 = vadd.f32 %v721_v14, %v108_v17  ;;  %v775_v19 = vpop.f32.mrb[2].mxu0 }
  0xe0   :  { %v959_v20 = vadd.f32 %v775_v19, %v721_v14  ;;  %v111_v21 = vpop.f32.mrb[3].mxu0  ;;  %v148_v22 = vsel %vm141_vm1, %v955_v16, 0.0  ;;  %v168_v24 = vmul.f32 %v955_v16, %v955_v16 }
  0xe1   :  { %149 = vadd.xlane.f32.xlu1 %v148_v22  ;;  %v142_v23 = vsel %vm141_vm1, %v957_v18, 0.0  ;;  %v967_v25 = vadd.f32 %v721_v14, %v111_v21  ;;  %v166_v36 = vmul.f32 %v957_v18, %v957_v18 }
  0xe2   :  { %143 = vadd.xlane.f32.xlu0 %v142_v23  ;;  %v151_v26 = vsel %vm141_vm1, %v959_v20, 0.0  ;;  %v169_v27 = vmul.f32 %v959_v20, %v959_v20  ;;  %v180_v28 = vsel %vm141_vm1, %v168_v24, 0.0 }
  0xe3   :  { %v167_v34 = vmul.f32 %v967_v25, %v967_v25  ;;  %v145_v35 = vsel %vm141_vm1, %v967_v25, 0.0  ;;  %v174_v40 = vsel %vm141_vm1, %v166_v36, 0.0 }
  0xe4   :  { %v183_v32 = vsel %vm141_vm1, %v169_v27, 0.0 }
  0xe5   :  { %152 = vadd.xlane.f32.xlu1 %v151_v26  ;;  %v778_v29 = vpop.f32.mrb[4].mxu0  ;;  %v177_v39 = vsel %vm141_vm1, %v167_v34, 0.0 }
  0xe6   :  { %181 = vadd.xlane.f32.xlu0 %v180_v28  ;;  %v124_v30 = vpop.f32.mrb[5].mxu0  ;;  %v983_v38 = vadd.f32 %v778_v29, %v721_v14 }
  0xe7   :  { %v779_v31 = vpop.f32.mrb[6].mxu0  ;;  %v993_v44 = vadd.f32 %v721_v14, %v124_v30 }
  0xe8   :  { %v127_v33 = vpop.f32.mrb[7].mxu0  ;;  %v981_v37 = vadd.f32 %v779_v31, %v721_v14  ;;  %v160_v42 = vsel %vm141_vm1, %v983_v38, 0.0  ;;  %v172_v52 = vmul.f32 %v983_v38, %v983_v38 }
  0xe9   :  { %184 = vadd.xlane.f32.xlu1 %v183_v32  ;;  %v991_v43 = vadd.f32 %v721_v14, %v127_v33  ;;  %v154_v47 = vsel %vm141_vm1, %v993_v44, 0.0  ;;  %v170_v48 = vmul.f32 %v993_v44, %v993_v44 }
  0xea   :  { %146 = vadd.xlane.f32.xlu0 %v145_v35  ;;  %v163_v41 = vsel %vm141_vm1, %v981_v37, 0.0  ;;  %v173_v50 = vmul.f32 %v981_v37, %v981_v37  ;;  %v192_v54 = vsel %vm141_vm1, %v172_v52, 0.0 }
  0xeb   :  { %v157_v45 = vsel %vm141_vm1, %v991_v43, 0.0  ;;  %v171_v46 = vmul.f32 %v991_v43, %v991_v43  ;;  %v186_v51 = vsel %vm141_vm1, %v170_v48, 0.0 }
  0xec   :  { %v195_v53 = vsel %vm141_vm1, %v173_v50, 0.0 }
  0xed   :  { %178 = vadd.xlane.f32.xlu1 %v177_v39  ;;  %v189_v49 = vsel %vm141_vm1, %v171_v46, 0.0 }
  0xee   :  { %175 = vadd.xlane.f32.xlu0 %v174_v40 }
  0xf1   :  { %164 = vadd.xlane.f32.xlu1 %v163_v41 }
  0xf2   :  { %161 = vadd.xlane.f32.xlu0 %v160_v42 }
  0xf5   :  { %158 = vadd.xlane.f32.xlu1 %v157_v45 }
  0xf6   :  { %155 = vadd.xlane.f32.xlu0 %v154_v47 }
  0xf9   :  { %190 = vadd.xlane.f32.xlu1 %v189_v49 }
  0xfa   :  { %187 = vadd.xlane.f32.xlu0 %v186_v51 }
  0xfd   :  { %196 = vadd.xlane.f32.xlu1 %v195_v53 }
  0xfe   :  { %193 = vadd.xlane.f32.xlu0 %v192_v54 }
 0x16e   :  { %v150_v59 = vpop.xlane.xlu1 %149 }
 0x16f   :  { %v144_v60 = vpop.xlane.xlu0 %143  ;;  %v200_v61 = vmul.f32 0.015625, %v150_v59 }
 0x170   :  { %v198_v8 = vmul.f32 0.015625, %v144_v60 }
 0x171   :  { %v216_v1 = vmul.f32 %v200_v61, %v200_v61  ;;  %v232_v34 = vsub.f32 %v955_v16, %v200_v61 }
 0x172   :  { %v153_v62 = vpop.xlane.xlu1 %152  ;;  %v214_v19 = vmul.f32 %v198_v8, %v198_v8  ;;  %v230_v51 = vsub.f32 %v957_v18, %v198_v8 }
 0x173   :  { %v201_v63 = vmul.f32 0.015625, %v153_v62  ;;  %v182_v0 = vpop.xlane.xlu0 %181 }
 0x174   :  { %v208_v2 = vmul.f32 0.015625, %v182_v0 }
 0x175   :  { %v217_v5 = vmul.f32 %v201_v63, %v201_v63  ;;  %v233_v35 = vsub.f32 %v959_v20, %v201_v63  ;;  %v728_v20 = vld [vmem:[%s1199_s2 + $0x1] ss:$0 sm:$0xff] }
 0x176   :  { %v224_v3 = vsub.f32 %v208_v2, %v216_v1  ;;  %v185_v4 = vpop.xlane.xlu1 %184  ;;  %v729_v2 = vld [vmem:[%s1199_s2 + $0x2] ss:$0 sm:$0xff] }
 0x177   :  { %v209_v6 = vmul.f32 0.015625, %v185_v4  ;;  %v147_v7 = vpop.xlane.xlu0 %146 }
 0x178   :  { %v240_v9 = vadd.f32 1e-05, %v224_v3  ;;  %v199_v10 = vmul.f32 0.015625, %v147_v7 }
 0x179   :  { %v225_v11 = vsub.f32 %v209_v6, %v217_v5 }
 0x17a   :  { %v215_v12 = vmul.f32 %v199_v10, %v199_v10  ;;  %v179_v13 = vpop.xlane.xlu1 %178  ;;  %819 = vrsqrt.f32 %v240_v9  ;;  %v231_v52 = vsub.f32 %v967_v25, %v199_v10 }
 0x17b   :  { %v241_v14 = vadd.f32 1e-05, %v225_v11  ;;  %v207_v15 = vmul.f32 0.015625, %v179_v13  ;;  %v176_v17 = vpop.xlane.xlu0 %175 }
 0x17c   :  { %v206_v21 = vmul.f32 0.015625, %v176_v17 }
 0x17d   :  { %821 = vrsqrt.f32 %v241_v14  ;;  %v223_v22 = vsub.f32 %v207_v15, %v215_v12 }
 0x17e   :  { %v222_v23 = vsub.f32 %v206_v21, %v214_v19  ;;  %v165_v24 = vpop.xlane.xlu1 %164 }
 0x17f   :  { %v239_v26 = vadd.f32 1e-05, %v223_v22  ;;  %v162_v27 = vpop.xlane.xlu0 %161  ;;  %v1029_v40 = vmul.f32 0.015625, %v165_v24 }
 0x180   :  { %v238_v28 = vadd.f32 1e-05, %v222_v23  ;;  %v1031_v41 = vmul.f32 0.015625, %v162_v27 }
 0x181   :  { %823 = vrsqrt.f32 %v239_v26  ;;  %v221_v57 = vmul.f32 %v1029_v40, %v1029_v40 }
 0x182   :  { %825 = vrsqrt.f32 %v238_v28  ;;  %v159_v29 = vpop.xlane.xlu1 %158  ;;  %v220_v58 = vmul.f32 %v1031_v41, %v1031_v41 }
 0x183   :  { %v1023_v30 = vmul.f32 0.015625, %v159_v29  ;;  %v156_v31 = vpop.xlane.xlu0 %155  ;;  %v237_v29 = vsub.f32 %v981_v37, %v1029_v40 }
 0x184   :  { %v1025_v32 = vmul.f32 0.015625, %v156_v31  ;;  %v820_v33 = vpop.eup %819 }
 0x185   :  { %v219_v42 = vmul.f32 %v1023_v30, %v1023_v30  ;;  %v256_v49 = vmul.f32 %v820_v33, %v232_v34  ;;  %v235_v21 = vsub.f32 %v991_v43, %v1023_v30  ;;  %v236_v43 = vsub.f32 %v983_v38, %v1031_v41  ;;  %v730_v38 = vld [vmem:[%s1201_s4] ss:$0 sm:$0xff] }
 0x186   :  { %v191_v36 = vpop.xlane.xlu1 %190  ;;  %v218_v47 = vmul.f32 %v1025_v32, %v1025_v32  ;;  %v234_v24 = vsub.f32 %v993_v44, %v1025_v32 }
 0x187   :  { %v822_v39 = vpop.eup %821  ;;  %v211_v45 = vmul.f32 0.015625, %v191_v36  ;;  %v188_v46 = vpop.xlane.xlu0 %187  ;;  %v268_v18 = vmul.f32 %v728_v20, %v256_v49 }
 0x188   :  { %v210_v48 = vmul.f32 0.015625, %v188_v46  ;;  %v257_v50 = vmul.f32 %v822_v39, %v233_v35 }
 0x189   :  { %v227_v16 = vsub.f32 %v211_v45, %v219_v42  ;;  %v280_v11 = vadd.f32 %v729_v2, %v268_v18 }
 0x18a   :  { %v226_v53 = vsub.f32 %v210_v48, %v218_v47  ;;  %v197_v54 = vpop.xlane.xlu1 %196  ;;  %v269_v55 = vmul.f32 %v728_v20, %v257_v50 }
 0x18b   :  { %v824_v56 = vpop.eup %823  ;;  %v243_v59 = vadd.f32 1e-05, %v227_v16  ;;  %v213_v60 = vmul.f32 0.015625, %v197_v54  ;;  %v194_v61 = vpop.xlane.xlu0 %193  ;;  %v288_v17 = vmax.f32 %v280_v11, 0.0 }
 0x18c   :  { %v826_v62 = vpop.eup %825  ;;  %v242_v63 = vadd.f32 1e-05, %v226_v53  ;;  %v212_v0 = vmul.f32 0.015625, %v194_v61  ;;  %v255_v1 = vmul.f32 %v824_v56, %v231_v52  ;;  %v281_v6 = vadd.f32 %v729_v2, %v269_v55 }
 0x18d   :  { %827 = vrsqrt.f32 %v243_v59  ;;  %v229_v25 = vsub.f32 %v213_v60, %v221_v57  ;;  %v254_v3 = vmul.f32 %v826_v62, %v230_v51 }
 0x18e   :  { %829 = vrsqrt.f32 %v242_v63  ;;  %v228_v4 = vsub.f32 %v212_v0, %v220_v58  ;;  %v267_v5 = vmul.f32 %v728_v20, %v255_v1  ;;  %v289_v14 = vmax.f32 %v281_v6, 0.0 }
 0x18f   :  { %v245_v7 = vadd.f32 1e-05, %v229_v25  ;;  %v266_v8 = vmul.f32 %v728_v20, %v254_v3 }
 0x190   :  { %v244_v9 = vadd.f32 1e-05, %v228_v4  ;;  %v279_v10 = vadd.f32 %v729_v2, %v267_v5  ;;  %v295_v22 = vpack.c.bf16 %v289_v14, %v288_v17 }
 0x191   :  { %831 = vrsqrt.f32 %v245_v7  ;;  %v278_v12 = vadd.f32 %v729_v2, %v266_v8 }
 0x192   :  { %833 = vrsqrt.f32 %v244_v9  ;;  %v287_v13 = vmax.f32 %v279_v10, 0.0 }
 0x193   :  { %v286_v15 = vmax.f32 %v278_v12, 0.0 }
 0x195   :  { %v294_v19 = vpack.c.bf16 %v287_v13, %v286_v15 }
 0x197   :  { %v828_v23 = vpop.eup %827  ;;  %788 = vmatprep.mubr.msk.bf16.mxu1 %vm141_vm1, %v294_v19 }
 0x198   :  { %v830_v26 = vpop.eup %829  ;;  %789 = vmatmul.mubr.msk.bf16.vlgmr.msra.gmra.mrb[0].mxu1 %vm141_vm1, %v295_v22  ;;  %v259_v27 = vmul.f32 %v828_v23, %v235_v21 }
 0x199   :  { %v258_v28 = vmul.f32 %v830_v26, %v234_v24  ;;  %v817_v26 = vld [vmem:[%s1202_s5] sm:$0xff]  }
 0x19a   :  { %v271_v31 = vmul.f32 %v728_v20, %v259_v27  ;;  %796 = vmatprep.subr.bf16.mxu0 %v817_v26  ;;  %v818_v27 = vld [vmem:[%s1202_s5 + $0x8] sm:$0xff]  }
 0x19b   :  { %v832_v33 = vpop.eup %831  ;;  %v270_v30 = vmul.f32 %v728_v20, %v258_v28  ;;  %797 = vmatpush3.bf16.msra.mxu0 %v817_v26 }
 0x19c   :  { %v834_v34 = vpop.eup %833  ;;  %v283_v35 = vadd.f32 %v729_v2, %v271_v31  ;;  %v261_v36 = vmul.f32 %v832_v33, %v237_v29  ;;  %798 = vmatprep.subr.bf16.mxu0 %v818_v27 }
 0x19d   :  { %v282_v44 = vadd.f32 %v729_v2, %v270_v30  ;;  %v260_v32 = vmul.f32 %v834_v34, %v236_v43 }
 0x19e   :  { %v291_v39 = vmax.f32 %v283_v35, 0.0  ;;  %v273_v42 = vmul.f32 %v728_v20, %v261_v36 }
 0x19f   :  { %v290_v45 = vmax.f32 %v282_v44, 0.0  ;;  %v272_v46 = vmul.f32 %v728_v20, %v260_v32  ;;  %799 = vmatpush3.bf16.msra.mxu0 %v818_v27 }
 0x1a0   :  { %v285_v47 = vadd.f32 %v729_v2, %v273_v42 }
 0x1a1   :  { %v296_v48 = vpack.c.bf16 %v291_v39, %v290_v45  ;;  %v284_v49 = vadd.f32 %v729_v2, %v272_v46 }
 0x1a2   :  { %v293_v50 = vmax.f32 %v285_v47, 0.0 }
 0x1a3   :  { %792 = vmatprep.mubr.msk.bf16.mxu1 %vm141_vm1, %v296_v48  ;;  %v292_v37 = vmax.f32 %v284_v49, 0.0 }
 0x1a5   :  { %v297_v40 = vpack.c.bf16 %v293_v50, %v292_v37 }
 0x1a7   :  { %793 = vmatmul.mubr.msk.bf16.gmra.mrb[4].mxu1 %vm141_vm1, %v297_v40 }
 0x26b   :  { %v790_v41 = vpop.f32.mrb[0].mxu1 }
 0x26c   :  { %v1064_v16 = vadd.f32 %v790_v41, %v730_v38  ;;  %v381_v51 = vpop.f32.mrb[1].mxu1 }
 0x26d   :  { %v791_v52 = vpop.f32.mrb[2].mxu1  ;;  %v1066_v20 = vadd.f32 %v730_v38, %v381_v51 }
 0x26e   :  { %v1068_v53 = vadd.f32 %v791_v52, %v730_v38  ;;  %v384_v54 = vpop.f32.mrb[3].mxu1  ;;  %v420_v55 = vsel %vm61_vm0, %v1064_v16, 0.0  ;;  %v440_v59 = vmul.f32 %v1064_v16, %v1064_v16 }
 0x26f   :  { %421 = vadd.xlane.f32.xlu0 %v420_v55  ;;  %v1072_v56 = vadd.f32 %v730_v38, %v384_v54  ;;  %v414_v58 = vsel %vm61_vm0, %v1066_v20, 0.0  ;;  %v438_v63 = vmul.f32 %v1066_v20, %v1066_v20 }
 0x270   :  { %v423_v57 = vsel %vm61_vm0, %v1068_v53, 0.0  ;;  %v441_v61 = vmul.f32 %v1068_v53, %v1068_v53  ;;  %v452_v62 = vsel %vm61_vm0, %v440_v59, 0.0 }
 0x271   :  { %424 = vadd.xlane.f32.xlu1 %v423_v57  ;;  %v417_v60 = vsel %vm61_vm0, %v1072_v56, 0.0  ;;  %v439_v1 = vmul.f32 %v1072_v56, %v1072_v56  ;;  %v446_v25 = vsel %vm61_vm0, %v438_v63, 0.0 }
 0x272   :  { %v455_v0 = vsel %vm61_vm0, %v441_v61, 0.0 }
 0x273   :  { %415 = vadd.xlane.f32.xlu0 %v414_v58  ;;  %v449_v5 = vsel %vm61_vm0, %v439_v1, 0.0 }
 0x275   :  { %418 = vadd.xlane.f32.xlu1 %v417_v60 }
 0x277   :  { %453 = vadd.xlane.f32.xlu0 %v452_v62 }
 0x279   :  { %456 = vadd.xlane.f32.xlu1 %v455_v0 }
 0x27a   :  { %v794_v18 = vpop.f32.mrb[4].mxu1 }
 0x27b   :  { %v1091_v2 = vadd.f32 %v794_v18, %v730_v38  ;;  %447 = vadd.xlane.f32.xlu0 %v446_v25  ;;  %v397_v3 = vpop.f32.mrb[5].mxu1 }
 0x27c   :  { %v795_v4 = vpop.f32.mrb[6].mxu1  ;;  %v1098_v9 = vadd.f32 %v730_v38, %v397_v3 }
 0x27d   :  { %v1094_v6 = vadd.f32 %v795_v4, %v730_v38  ;;  %450 = vadd.xlane.f32.xlu1 %v449_v5  ;;  %v400_v7 = vpop.f32.mrb[7].mxu1  ;;  %v432_v8 = vsel %vm61_vm0, %v1091_v2, 0.0  ;;  %v444_v19 = vmul.f32 %v1091_v2, %v1091_v2 }
 0x27e   :  { %v1102_v11 = vadd.f32 %v730_v38, %v400_v7  ;;  %v426_v12 = vsel %vm61_vm0, %v1098_v9, 0.0  ;;  %v442_v13 = vmul.f32 %v1098_v9, %v1098_v9 }
 0x27f   :  { %433 = vadd.xlane.f32.xlu0 %v432_v8  ;;  %v435_v10 = vsel %vm61_vm0, %v1094_v6, 0.0  ;;  %v445_v22 = vmul.f32 %v1094_v6, %v1094_v6  ;;  %v464_v23 = vsel %vm61_vm0, %v444_v19, 0.0 }
 0x280   :  { %v429_v14 = vsel %vm61_vm0, %v1102_v11, 0.0  ;;  %v443_v15 = vmul.f32 %v1102_v11, %v1102_v11  ;;  %v458_v17 = vsel %vm61_vm0, %v442_v13, 0.0  ;;  %v1141_v13 = vld [vmem:[%s1201_s4 + $0x1] ss:$0 sm:$0xff] }
 0x281   :  { %436 = vadd.xlane.f32.xlu1 %v435_v10  ;;  %v467_v24 = vsel %vm61_vm0, %v445_v22, 0.0 }
 0x282   :  { %v461_v21 = vsel %vm61_vm0, %v443_v15, 0.0 }
 0x283   :  { %427 = vadd.xlane.f32.xlu0 %v426_v12 }
 0x285   :  { %430 = vadd.xlane.f32.xlu1 %v429_v14 }
 0x287   :  { %459 = vadd.xlane.f32.xlu0 %v458_v17 }
 0x289   :  { %462 = vadd.xlane.f32.xlu1 %v461_v21 }
 0x28b   :  { %465 = vadd.xlane.f32.xlu0 %v464_v23 }
 0x28d   :  { %468 = vadd.xlane.f32.xlu1 %v467_v24 }
 0x2fc   :  { %v422_v28 = vpop.xlane.xlu0 %421 }
 0x2fd   :  { %v472_v33 = vmul.f32 0.03125, %v422_v28 }
 0x2fe   :  { %v425_v29 = vpop.xlane.xlu1 %424 }
 0x2ff   :  { %v473_v30 = vmul.f32 0.03125, %v425_v29  ;;  %v488_v35 = vmul.f32 %v472_v33, %v472_v33  ;;  %v504_v0 = vsub.f32 %v1064_v16, %v472_v33 }
 0x300   :  { %v416_v31 = vpop.xlane.xlu0 %415 }
 0x301   :  { %v470_v36 = vmul.f32 0.03125, %v416_v31  ;;  %v489_v42 = vmul.f32 %v473_v30, %v473_v30  ;;  %v505_v5 = vsub.f32 %v1068_v53, %v473_v30 }
 0x302   :  { %v419_v43 = vpop.xlane.xlu1 %418 }
 0x303   :  { %v1126_v32 = vmul.f32 0.03125, %v419_v43  ;;  %v486_v48 = vmul.f32 %v470_v36, %v470_v36  ;;  %v502_v17 = vsub.f32 %v1066_v20, %v470_v36 }
 0x304   :  { %v454_v34 = vpop.xlane.xlu0 %453 }
 0x305   :  { %v480_v44 = vmul.f32 0.03125, %v454_v34  ;;  %v487_v40 = vmul.f32 %v1126_v32, %v1126_v32  ;;  %v503_v53 = vsub.f32 %v1072_v56, %v1126_v32 }
 0x306   :  { %v457_v39 = vpop.xlane.xlu1 %456 }
 0x307   :  { %v496_v45 = vsub.f32 %v480_v44, %v488_v35  ;;  %v481_v46 = vmul.f32 0.03125, %v457_v39  ;;  %v740_v35 = vld [vmem:[%s1201_s4 + $0x2] ss:$0 sm:$0xff] }
 0x308   :  { %v448_v47 = vpop.xlane.xlu0 %447 }
 0x309   :  { %v512_v49 = vadd.f32 1e-05, %v496_v45  ;;  %v497_v50 = vsub.f32 %v481_v46, %v489_v42  ;;  %v478_v37 = vmul.f32 0.03125, %v448_v47 }
 0x30a   :  { %v451_v38 = vpop.xlane.xlu1 %450 }
 0x30b   :  { %835 = vrsqrt.f32 %v512_v49  ;;  %v513_v41 = vadd.f32 1e-05, %v497_v50  ;;  %v494_v51 = vsub.f32 %v478_v37, %v486_v48  ;;  %v479_v52 = vmul.f32 0.03125, %v451_v38 }
 0x30c   :  { %v434_v54 = vpop.xlane.xlu0 %433 }
 0x30d   :  { %837 = vrsqrt.f32 %v513_v41  ;;  %v510_v55 = vadd.f32 1e-05, %v494_v51  ;;  %v495_v57 = vsub.f32 %v479_v52, %v487_v40  ;;  %v1133_v25 = vmul.f32 0.03125, %v434_v54 }
 0x30e   :  { %v437_v58 = vpop.xlane.xlu1 %436 }
 0x30f   :  { %839 = vrsqrt.f32 %v510_v55  ;;  %v511_v59 = vadd.f32 1e-05, %v495_v57  ;;  %v1136_v8 = vmul.f32 0.03125, %v437_v58  ;;  %v492_v23 = vmul.f32 %v1133_v25, %v1133_v25 }
 0x310   :  { %v428_v60 = vpop.xlane.xlu0 %427 }
 0x311   :  { %841 = vrsqrt.f32 %v511_v59  ;;  %v474_v61 = vmul.f32 0.03125, %v428_v60  ;;  %v493_v31 = vmul.f32 %v1136_v8, %v1136_v8  ;;  %v508_v59 = vsub.f32 %v1091_v2, %v1133_v25 }
 0x312   :  { %v431_v62 = vpop.xlane.xlu1 %430 }
 0x313   :  { %v1130_v63 = vmul.f32 0.03125, %v431_v62  ;;  %v490_v3 = vmul.f32 %v474_v61, %v474_v61  ;;  %v506_v41 = vsub.f32 %v1098_v9, %v474_v61  ;;  %v509_v9 = vsub.f32 %v1094_v6, %v1136_v8 }
 0x314   :  { %v460_v1 = vpop.xlane.xlu0 %459 }
 0x315   :  { %v836_v18 = vpop.eup %835  ;;  %v482_v4 = vmul.f32 0.03125, %v460_v1  ;;  %v491_v16 = vmul.f32 %v1130_v63, %v1130_v63  ;;  %v507_v55 = vsub.f32 %v1102_v11, %v1130_v63 }
 0x316   :  { %v528_v7 = vmul.f32 %v836_v18, %v504_v0  ;;  %v463_v10 = vpop.xlane.xlu1 %462 }
 0x317   :  { %v838_v12 = vpop.eup %837  ;;  %v498_v14 = vsub.f32 %v482_v4, %v490_v3  ;;  %v483_v15 = vmul.f32 0.03125, %v463_v10 }
 0x318   :  { %v529_v19 = vmul.f32 %v838_v12, %v505_v5  ;;  %v466_v21 = vpop.xlane.xlu0 %465  ;;  %v540_v28 = vmul.f32 %v1141_v13, %v528_v7 }
 0x319   :  { %v840_v22 = vpop.eup %839  ;;  %v514_v24 = vadd.f32 1e-05, %v498_v14  ;;  %v499_v26 = vsub.f32 %v483_v15, %v491_v16  ;;  %v484_v27 = vmul.f32 0.03125, %v466_v21  ;;  %v670_v14 = vlaneseq  ;;  %v741_v15 = vld [vmem:[%s1203_s6] ss:$0 sm:$0xff]  ;;  %s875_s6 = smov [#allocation2]  }
 0x31a   :  { %v541_v29 = vmul.f32 %v1141_v13, %v529_v19  ;;  %v469_v20 = vpop.xlane.xlu1 %468  ;;  %v526_v33 = vmul.f32 %v840_v22, %v502_v17  ;;  %v552_v47 = vadd.f32 %v740_v35, %v540_v28  ;;  %s710_s17 = sshll.u32 %s875_s6, 4  ;;  %s711_s17 = int_to_ptr.vmem [resolvable:$true] %s710_s17 }
 0x31b   :  { %v842_v43 = vpop.eup %841  ;;  %843 = vrsqrt.f32 %v514_v24  ;;  %v515_v56 = vadd.f32 1e-05, %v499_v26  ;;  %v500_v30 = vsub.f32 %v484_v27, %v492_v23  ;;  %v485_v34 = vmul.f32 0.03125, %v469_v20  ;;  %s851_s18 = scalar_lea.vmem %s711_s17, 1024  ;;  %p856_p1 = scmp.lt.s32.totalorder %s711_s17, %s711_s17 }
 0x31c   :  { %v527_v36 = vmul.f32 %v842_v43, %v503_v53  ;;  %v538_v44 = vmul.f32 %v1141_v13, %v526_v33  ;;  %v553_v32 = vadd.f32 %v740_v35, %v541_v29  ;;  %v560_v38 = vmax.f32 %v552_v47, 0.0  ;;  %p852_p0 = scmp.ne.s32.totalorder %s711_s17, %s851_s18  ;;  %p857_p2 = scmp.lt.s32.totalorder %s851_s18, %s851_s18 }
 0x31d   :  { %845 = vrsqrt.f32 %v515_v56  ;;  %v516_v39 = vadd.f32 1e-05, %v500_v30  ;;  %v501_v42 = vsub.f32 %v485_v34, %v493_v31  ;;  %v671_v53 = vand.u32 127, %v670_v14 }
 0x31e   :  { %v539_v45 = vmul.f32 %v1141_v13, %v527_v36  ;;  %v550_v46 = vadd.f32 %v740_v35, %v538_v44  ;;  %v561_v50 = vmax.f32 %v553_v32, 0.0  ;;  %p858_p3 = por %p857_p2, %p856_p1 }
 0x31f   :  { %847 = vrsqrt.f32 %v516_v39  ;;  %v517_v48 = vadd.f32 1e-05, %v501_v42  ;;  %vm672_vm2 = vcmp.lt.s32.totalorder %v671_v53, 8 }
 0x320   :  { %v551_v49 = vadd.f32 %v740_v35, %v539_v45  ;;  %v558_v37 = vmax.f32 %v550_v46, 0.0  ;;  %v567_v54 = vpack.c.bf16 %v561_v50, %v560_v38  ;;  %p859_p4 = pnand %p858_p3, %p852_p0 }
 0x321   :  { %849 = vrsqrt.f32 %v517_v48 }
 0x322   :  { %v559_v40 = vmax.f32 %v551_v49, 0.0 }
 0x324   :  { %v566_v51 = vpack.c.bf16 %v559_v40, %v558_v37 }
 0x325   :  { %v844_v52 = vpop.eup %843 }
 0x326   :  { %800 = vmatprep.mubr.msk.bf16.mxu0 %vm61_vm0, %v566_v51  ;;  %v530_v57 = vmul.f32 %v844_v52, %v506_v41 }
 0x327   :  { %v846_v58 = vpop.eup %845  ;;  %801 = vmatmul.mubr.msk.bf16.vlgmr.msra.gmra.mrb[8].mxu0 %vm61_vm0, %v567_v54 }
 0x328   :  { %v531_v60 = vmul.f32 %v846_v58, %v507_v55  ;;  %v542_v62 = vmul.f32 %v1141_v13, %v530_v57 }
 0x329   :  { %v848_v0 = vpop.eup %847 }
 0x32a   :  { %v532_v61 = vmul.f32 %v848_v0, %v508_v59  ;;  %v543_v1 = vmul.f32 %v1141_v13, %v531_v60  ;;  %v554_v11 = vadd.f32 %v740_v35, %v542_v62 }
 0x32b   :  { %v850_v63 = vpop.eup %849 }
 0x32c   :  { %v533_v18 = vmul.f32 %v850_v63, %v509_v9  ;;  %v555_v3 = vadd.f32 %v740_v35, %v543_v1  ;;  %v544_v4 = vmul.f32 %v1141_v13, %v532_v61  ;;  %v562_v5 = vmax.f32 %v554_v11, 0.0 }
 0x32e   :  { %v563_v7 = vmax.f32 %v555_v3, 0.0  ;;  %v545_v2 = vmul.f32 %v1141_v13, %v533_v18  ;;  %v556_v25 = vadd.f32 %v740_v35, %v544_v4 }
 0x330   :  { %v568_v10 = vpack.c.bf16 %v563_v7, %v562_v5  ;;  %v557_v12 = vadd.f32 %v740_v35, %v545_v2  ;;  %v564_v16 = vmax.f32 %v556_v25, 0.0 }
 0x332   :  { %804 = vmatprep.mubr.msk.bf16.mxu0 %vm61_vm0, %v568_v10  ;;  %v565_v6 = vmax.f32 %v557_v12, 0.0 }
 0x334   :  { %v569_v8 = vpack.c.bf16 %v565_v6, %v564_v16 }
 0x336   :  { %805 = vmatmul.mubr.msk.bf16.gmra.mrb[12].mxu0 %vm61_vm0, %v569_v8 }
 0x3fa   :  { %v802_v17 = vpop.f32.mrb[8].mxu0 }
 0x3fb   :  { %v648_v19 = vadd.f32 %v802_v17, %v741_v15  ;;  %v639_v21 = vpop.f32.mrb[9].mxu0 }
 0x3fc   :  { %v640_v13 = vadd.f32 %v741_v15, %v639_v21  ;;  %v803_v22 = vpop.f32.mrb[10].mxu0 }
 0x3fd   :  { %v675_v23 = vmax.f32 %v648_v19, -20.0  ;;  %v651_v24 = vadd.f32 %v803_v22, %v741_v15  ;;  %v642_v26 = vpop.f32.mrb[11].mxu0 }
 0x3fe   :  { %v673_v27 = vmax.f32 %v640_v13, -20.0  ;;  %v643_v28 = vadd.f32 %v741_v15, %v642_v26 }
 0x3ff   :  { %v683_v29 = vmin.f32 %v675_v23, 2.0  ;;  %v676_v31 = vmax.f32 %v651_v24, -20.0 }
 0x400   :  { %v681_v20 = vmin.f32 %v673_v27, 2.0  ;;  %v674_v33 = vmax.f32 %v643_v28, -20.0 }
 0x401   :  { %v691_v43 = vsel %vm672_vm2, %v648_v19, %v683_v29  ;;  %v684_v56 = vmin.f32 %v676_v31, 2.0 }
 0x402   :  { %699 = vst [vmem:[#allocation2 + $0x10] sm:$0xff] %v691_v43  ;;  %v689_v30 = vsel %vm672_vm2, %v640_v13, %v681_v20  ;;  %v682_v34 = vmin.f32 %v674_v33, 2.0 }
 0x403   :  { %697 = vst [vmem:[#allocation2] sm:$0xff] %v689_v30  ;;  %v692_v35 = vsel %vm672_vm2, %v651_v24, %v684_v56 }
 0x404   :  { %700 = vst [vmem:[#allocation2 + $0x18] sm:$0xff] %v692_v35  ;;  %v690_v36 = vsel %vm672_vm2, %v643_v28, %v682_v34 }
 0x405   :  { %698 = vst [vmem:[#allocation2 + $0x8] sm:$0xff] %v690_v36 }
 0x409   :  { %v806_v44 = vpop.f32.mrb[12].mxu0 }
 0x40a   :  { %v664_v32 = vadd.f32 %v806_v44, %v741_v15  ;;  %v655_v39 = vpop.f32.mrb[13].mxu0 }
 0x40b   :  { %v656_v42 = vadd.f32 %v741_v15, %v655_v39  ;;  %v807_v45 = vpop.f32.mrb[14].mxu0 }
 0x40c   :  { %v679_v46 = vmax.f32 %v664_v32, -20.0  ;;  %v667_v47 = vadd.f32 %v807_v45, %v741_v15  ;;  %v658_v48 = vpop.f32.mrb[15].mxu0 }
 0x40d   :  { %v677_v49 = vmax.f32 %v656_v42, -20.0  ;;  %v659_v50 = vadd.f32 %v741_v15, %v658_v48 }
 0x40e   :  { %v687_v37 = vmin.f32 %v679_v46, 2.0  ;;  %v680_v40 = vmax.f32 %v667_v47, -20.0 }
 0x40f   :  { %v685_v38 = vmin.f32 %v677_v49, 2.0  ;;  %v678_v41 = vmax.f32 %v659_v50, -20.0 }
 0x410   :  { %v695_v51 = vsel %vm672_vm2, %v664_v32, %v687_v37  ;;  %v688_v52 = vmin.f32 %v680_v40, 2.0 }
 0x411   :  { %703 = vst [vmem:[#allocation2 + $0x30] sm:$0xff] %v695_v51  ;;  %v693_v54 = vsel %vm672_vm2, %v656_v42, %v685_v38  ;;  %v686_v55 = vmin.f32 %v678_v41, 2.0 }
 0x412   :  { %701 = vst [vmem:[#allocation2 + $0x20] sm:$0xff] %v693_v54  ;;  %v696_v57 = vsel %vm672_vm2, %v667_v47, %v688_v52 }
 0x413   :  { %704 = vst [vmem:[#allocation2 + $0x38] sm:$0xff] %v696_v57  ;;  %v694_v58 = vsel %vm672_vm2, %v659_v50, %v686_v55 }
 0x414   :  { %702 = vst [vmem:[#allocation2 + $0x28] sm:$0xff] %v694_v58 }
 0x415   :  { %862 = shalt.err (!%p859_p4)
}
 0x416   :  { %s863_s21 = scalar_lea.hbm %s1204_s7, 1024 }
 0x417   :  { %p864_p5 = scmp.ne.s32.totalorder %s1204_s7, %s863_s21  ;;  %p867_p6 = scmp.lt.u32.totalorder %s863_s21, %s1204_s7 }
 0x419   :  { %p869_p7 = pnand %p867_p6, %p864_p5 }
 0x41b   :  { %872 = shalt.err (!%p869_p7)
}
 0x41c   :  { %s876_s25 = smov 128   ;;  %s877_s26 = smov 8  }
 0x41d   :  { %716 = dma.vmem_to_hbm [thread:$0]  %s711_s17, 1024, %s1204_s7, [#allocation3], %s876_s25, %s876_s25, %s877_s26  }
 0x41e   :  { %873 = dma.done.wait [#allocation3], 1024  }
 0x41f   :  { %874 = vsyncadd [#allocation3], 4294966272 }
 0x420   :  { %720 = vsyncpa [#allocation3], 1 }

</bundles_post_ra>
